<compile_context>
chip_gen: v7x
topology: tpu7x:2x2x1
jax: 0.10.0
libtpu: 0.0.40
codegen_flags: <defaults>
</compile_context>

<pallas_src>
import jax
import jax.numpy as jnp
from jax.experimental import pallas as pl
from jax.experimental.pallas import tpu as pltpu


def _linear_kernel(x_ref, w_ref, b_ref, o_ref):
    # (tm, K) x-tile @ (K, N) resident bf16 weight -> (tm, N) out tile.
    # bf16 MXU operands, f32 accumulation, f32 bias add, cast to output dtype.
    x = x_ref[...].astype(jnp.bfloat16)
    acc = jnp.dot(x, w_ref[...], preferred_element_type=jnp.float32)
    o_ref[...] = (acc + b_ref[...]).astype(o_ref.dtype)


def _round_up(x, m):
    return ((x + m - 1) // m) * m


def _cdiv(a, b):
    return (a + b - 1) // b


def _physical_vmem_bytes():
    # Trace-time hardware query; fall back to the most conservative per-core
    # figure (v7x: 64 MiB per TensorCore) if the query is unavailable.
    try:
        return int(pltpu.get_tpu_info().vmem_capacity_bytes)
    except Exception:
        return 64 * 1024 * 1024


_VMEM_PHYS = _physical_vmem_bytes()
_MIB = 1024 * 1024


@jax.jit
def mesh_feature_embedder(mesh_feature, weight, bias):
    """mesh_feature: (..., input_dim); weight: (latent_dim, input_dim); bias: (latent_dim,)."""
    input_dim = mesh_feature.shape[-1]
    latent_dim = weight.shape[0]
    lead = mesh_feature.shape[:-1]
    out_dtype = mesh_feature.dtype

    x = mesh_feature.reshape(-1, input_dim)      # (M, input_dim), free reshape
    m = x.shape[0]
    if m == 0:
        return jnp.zeros((*lead, latent_dim), out_dtype)

    # Lane-dense packing factor: fold `pack` consecutive rows into one packed
    # row.  Reduce pack (power of two) until it divides M exactly so the
    # packed reshape is free and no input pad/copy is ever materialized.
    pack = 1
    if 0 < latent_dim < 128 and 128 % latent_dim == 0:
        pack = 128 // latent_dim
    while pack > 1 and m % pack != 0:
        pack //= 2

    k_dim = pack * input_dim
    n_dim = pack * latent_dim
    m_packed = m // pack
    x_packed = x.reshape(m_packed, k_dim)        # contiguous, free reshape

    # Packed weight: block-diagonal kron(I_pack, W^T): packed output row r,
    # lanes [k*latent : (k+1)*latent] == x[pack*r + k] @ W^T + b.  Folds in the
    # W^T transpose; stays VMEM-resident.  Pre-cast to bf16 for the MXU; bias
    # stays f32 and is added on the f32 accumulator.
    wt = weight.T
    if pack > 1:
        w_eff = jnp.kron(jnp.eye(pack, dtype=weight.dtype), wt)
        b_eff = jnp.tile(bias, pack).reshape(1, n_dim)
    else:
        w_eff = wt
        b_eff = bias.reshape(1, latent_dim)
    w_eff = w_eff.astype(jnp.bfloat16)
    b_eff = b_eff.astype(jnp.float32)

    # --- Generation-aware row tile (derived from a VMEM budget) --------------
    x_bytes = jnp.dtype(x.dtype).itemsize
    o_bytes = jnp.dtype(out_dtype).itemsize
    w_bytes = 2 * k_dim * n_dim * 2                        # double-buffered bf16 weight
    per_row = 2 * k_dim * x_bytes + 2 * n_dim * o_bytes    # dbl-buffered x + out per packed row
    if _VMEM_PHYS >= 96 * _MIB:                            # v5e / v6e: 128 MiB VMEM
        budget, tm_cap = 72 * _MIB, 4096
    else:                                                  # v7x: 64 MiB per TensorCore
        budget, tm_cap = 40 * _MIB, 2048
    budget = min(budget, _VMEM_PHYS // 2)
    avail = max(budget - w_bytes - _MIB, per_row * 8)
    tm = min((avail // per_row) // 8 * 8, tm_cap)
    if m_packed <= 8:
        tm = m_packed                                      # block == full array extent
    else:
        # >= 2 grid steps when possible so v7x's 2 TensorCores both get work.
        tm = max(8, min(tm, _round_up(_cdiv(m_packed, 2), 8)))
    grid = (_cdiv(m_packed, tm),)

    vmem_used = tm * per_row + w_bytes + 64 * 1024
    vmem_limit = int(min(max(vmem_used + 4 * _MIB, 32 * _MIB), _VMEM_PHYS - 8 * _MIB))

    out_packed = pl.pallas_call(
        _linear_kernel,
        out_shape=jax.ShapeDtypeStruct((m_packed, n_dim), out_dtype),
        grid_spec=pltpu.PrefetchScalarGridSpec(
            num_scalar_prefetch=0,
            grid=grid,
            in_specs=[
                pl.BlockSpec((tm, k_dim), lambda i: (i, 0)),      # x row tile
                pl.BlockSpec((k_dim, n_dim), lambda i: (0, 0)),   # resident packed weight
                pl.BlockSpec((1, n_dim), lambda i: (0, 0)),       # resident packed bias
            ],
            out_specs=pl.BlockSpec((tm, n_dim), lambda i: (i, 0)),
        ),
        compiler_params=pltpu.CompilerParams(
            dimension_semantics=("parallel",),
            vmem_limit_bytes=vmem_limit,
        ),
    )(x_packed, w_eff, b_eff)

    # (m_packed, pack*latent) row-major is byte-identical to (M, latent).
    return out_packed.reshape(*lead, latent_dim)


if __name__ == "__main__":
    # Small shapes consistent with the module: input_dim=256, latent_dim=32.
    input_dim = 256
    latent_dim = 32

    key = jax.random.PRNGKey(0)
    kw, kb, k1, k2, k3 = jax.random.split(key, 5)

    # nn.Linear-style init (uniform in +-1/sqrt(in)).
    bound = 1.0 / jnp.sqrt(jnp.float32(input_dim))
    weight = jax.random.uniform(kw, (latent_dim, input_dim), jnp.float32, -bound, bound)
    bias = jax.random.uniform(kb, (latent_dim,), jnp.float32, -bound, bound)

    def ref_fn(xin):
        # Reference with the same bf16 operand rounding (f32 accumulation).
        xb = xin.astype(jnp.bfloat16).astype(jnp.float32)
        wb = weight.astype(jnp.bfloat16).astype(jnp.float32)
        return jnp.einsum("...k,nk->...n", xb, wb,
                          precision=jax.lax.Precision.HIGHEST) + bias

    # Case 1: nicely shaped (pack=4).  Case 2: ragged rows (pack falls to 1).
    # Case 3: rows divisible by 2 only (pack=2).
    cases = [((2, 8), k1), ((3, 5), k2), ((2, 7), k3)]
    for (b, s), kx in cases:
        mesh_feature = jax.random.normal(kx, (b, s, input_dim), dtype=jnp.float32)
        out = mesh_feature_embedder(mesh_feature, weight, bias)
        jax.block_until_ready(out)
        assert out.shape == (b, s, latent_dim)
        ref = ref_fn(mesh_feature)
        assert jnp.allclose(out, ref, atol=2e-3, rtol=2e-3), (b, s)

    print("KERNEL_OK")
</pallas_src>

<mosaic_0001>
module attributes {stable_mosaic.version = 11 : i64} {
  func.func @_linear_kernel(%arg0: i32, %arg1: memref<4x1024xf32, #tpu.memory_space<vmem>>, %arg2: memref<1024x128xbf16, #tpu.memory_space<vmem>>, %arg3: memref<1x128xf32, #tpu.memory_space<vmem>>, %arg4: memref<4x128xf32, #tpu.memory_space<vmem>>) attributes {dimension_semantics = [#tpu.dimension_semantics<parallel>], iteration_bounds = array<i64: 1>, scalar_prefetch = 0 : i64, scratch_operands = 0 : i64, tpu.core_type = #tpu.core_type<tc>, window_params = [{transform_indices = @transform_0, window_bounds = array<i64: 4, 1024>}, {pipeline_mode = #tpu.pipeline_mode<synchronous>, transform_indices = @transform_1, window_bounds = array<i64: 1024, 128>}, {pipeline_mode = #tpu.pipeline_mode<synchronous>, transform_indices = @transform_2, window_bounds = array<i64: 1, 128>}, {transform_indices = @transform_3, window_bounds = array<i64: 4, 128>}]} {
    %c0 = arith.constant 0 : index
    %c0_0 = arith.constant 0 : index
    %0 = vector.load %arg1[%c0, %c0_0] : memref<4x1024xf32, #tpu.memory_space<vmem>>, vector<4x1024xf32>
    %1 = arith.truncf %0 : vector<4x1024xf32> to vector<4x1024xbf16>
    %c0_1 = arith.constant 0 : index
    %c0_2 = arith.constant 0 : index
    %2 = vector.load %arg2[%c0_1, %c0_2] : memref<1024x128xbf16, #tpu.memory_space<vmem>>, vector<1024x128xbf16>
    %cst = arith.constant dense<0.000000e+00> : vector<4x128xf32>
    %3 = tpu.matmul %1, %2, %cst {dimension_numbers = #tpu.dot_dimension_numbers<[1], [0], [0], [1], [0, 0, 1, 1], [], []>} : vector<4x1024xbf16>, vector<1024x128xbf16>, vector<4x128xf32> -> vector<4x128xf32>
    %c0_3 = arith.constant 0 : index
    %c0_4 = arith.constant 0 : index
    %4 = vector.load %arg3[%c0_3, %c0_4] : memref<1x128xf32, #tpu.memory_space<vmem>>, vector<1x128xf32>
    %5 = vector.broadcast %4 : vector<1x128xf32> to vector<4x128xf32>
    %6 = arith.addf %3, %5 : vector<4x128xf32>
    %c0_5 = arith.constant 0 : index
    %c0_6 = arith.constant 0 : index
    %7 = vector.load %arg4[%c0_5, %c0_6] : memref<4x128xf32, #tpu.memory_space<vmem>>, vector<4x128xf32>
    tpu.vector_store %arg4[%c0_5, %c0_6], %6 {strides = array<i32>} : memref<4x128xf32, #tpu.memory_space<vmem>>, vector<4x128xf32>,
    return
  }
  func.func @transform_0(%arg0: i32) -> (i32, i32) {
    %c0_i32 = arith.constant 0 : i32
    %c0_i32_0 = arith.constant 0 : i32
    return %arg0, %c0_i32 : i32, i32
  }
  func.func @transform_1(%arg0: i32) -> (i32, i32) {
    %c0_i32 = arith.constant 0 : i32
    %c0_i32_0 = arith.constant 0 : i32
    %c0_i32_1 = arith.constant 0 : i32
    return %c0_i32, %c0_i32_0 : i32, i32
  }
  func.func @transform_2(%arg0: i32) -> (i32, i32) {
    %c0_i32 = arith.constant 0 : i32
    %c0_i32_0 = arith.constant 0 : i32
    %c0_i32_1 = arith.constant 0 : i32
    return %c0_i32, %c0_i32_0 : i32, i32
  }
  func.func @transform_3(%arg0: i32) -> (i32, i32) {
    %c0_i32 = arith.constant 0 : i32
    %c0_i32_0 = arith.constant 0 : i32
    return %arg0, %c0_i32 : i32, i32
  }
}

</mosaic_0001>

<bundles_post_ra>
// kernel: tile.8
= control target key start
LH: loop header
LB: loop body
LE: loop exit
PB: predicated region body
PF: predicated region fallthrough
CT: control target
= control target key end

     0   :  { %s22_s0 = inlined_call_operand.vmem [shape: f32[32], index: 0, kind: input, shape index: {}]   ;;  %s23_s1 = inlined_call_operand.vmem [shape: f32[4,32], index: 1, kind: output, shape index: {}]  }
   0x1   :  { %v4_v0 = vld [vmem:[%s22_s0] ss:$0 sm:$0xff] }
   0x2   :  { %5 = vst [vmem:[%s23_s1] sm:$0xf] %v4_v0 }

// kernel: tile.9
= control target key start
LH: loop header
LB: loop body
LE: loop exit
PB: predicated region body
PF: predicated region fallthrough
CT: control target
= control target key end

     0   :  { %vm7_vm0 = vcmask 261120   ;;  %s37_s8 = smov 32   ;;  %s38_s9 = smov 64   ;;  %vm13_vm1 = vcmask 1048320   ;;  %vm19_vm2 = vcmask 785920   ;;  %vm25_vm3 = vcmask 523520   ;;  %s55_s0 = inlined_call_operand.vmem [shape: f32[4,32], index: 0, kind: input, shape index: {}]   ;;  %s56_s1 = inlined_call_operand.vmem [shape: f32[1,128], index: 1, kind: output, shape index: {}]  }
   0x1   :  { %v4_v0 = vld [vmem:[%s55_s0] sm:$0xf]  ;;  %s36_s0 = smov 96  }
   0x2   :  { %5 = vst [vmem:[#allocation1] sm:$0xf] %v4_v0 }
   0x9   :  { %v10_v1 = vld [vmem:[#allocation1 + $0x3] sm:$0x1]   ;;  %v22_v2 = vld [vmem:[#allocation1 + $0x1] sm:$0x1]   ;;  %v6_v3 = vld [vmem:[#allocation1] sm:$0x1]  }
   0xa   :  { %11 = vrot.lane.b32.xlu0 %v10_v1, %s36_s0  ;;  %23 = vrot.lane.b32.xlu1 %v22_v2, %s37_s8  ;;  %v16_v4 = vld [vmem:[#allocation1 + $0x2] sm:$0x1]   ;;  %8 = vst.msk [vmem:[#allocation0] sm:$0x1] %vm7_vm0, %v6_v3  }
   0xe   :  { %17 = vrot.lane.b32.xlu0 %v16_v4, %s38_s9 }
  0x7c   :  { %v12_v5 = vpop.permute.xlu0 %11   ;;  %v24_v6 = vpop.permute.xlu1 %23  }
  0x7d   :  { %14 = vst.msk [vmem:[#allocation0] sm:$0x1] %vm13_vm1, %v12_v5  }
  0x80   :  { %v18_v7 = vpop.permute.xlu0 %17  }
  0x81   :  { %20 = vst.msk [vmem:[#allocation0] sm:$0x1] %vm19_vm2, %v18_v7  }
  0x82   :  { %26 = vst.msk [vmem:[#allocation0] sm:$0x1] %vm25_vm3, %v24_v6  }
  0x89   :  { %v30_v8 = vld [vmem:[#allocation0] sm:$0x1] }
  0x8a   :  { %32 = vst [vmem:[%s56_s1] sm:$0x1] %v30_v8 }

// kernel: mesh_feature_embedder.1
= control target key start
LH: loop header
LB: loop body
LE: loop exit
PB: predicated region body
PF: predicated region fallthrough
CT: control target
= control target key end

     0   :  { %s1174_s1 = inlined_call_operand.vmem [shape: bf16[1024,128], index: 1, kind: input, shape index: {}]   ;;  %s1175_s0 = inlined_call_operand.vmem [shape: f32[4,1024], index: 0, kind: input, shape index: {}]   ;;  %s1176_s2 = inlined_call_operand.vmem [shape: f32[1,128], index: 2, kind: input, shape index: {}]   ;;  %s1177_s3 = inlined_call_operand.vmem [shape: f32[4,128], index: 3, kind: output, shape index: {}]  }
   0x1   :  { %v876_v0 = vld [vmem:[%s1174_s1 + $0x40] sm:$0xff]   ;;  %v880_v4 = vld [vmem:[%s1174_s1 + $0x48] sm:$0xff]   ;;  %v884_v8 = vld [vmem:[%s1174_s1 + $0x50] sm:$0xff]  }
   0x2   :  { %v877_v1 = vld [vmem:[%s1174_s1 + $0xc0] sm:$0xff]   ;;  %788 = vmatprep.subr.bf16.mxu0 %v876_v0  ;;  %v881_v5 = vld [vmem:[%s1174_s1 + $0xc8] sm:$0xff]   ;;  %v885_v9 = vld [vmem:[%s1174_s1 + $0xd0] sm:$0xff]  }
   0x3   :  { %v878_v2 = vld [vmem:[%s1174_s1] sm:$0xff]   ;;  %810 = vmatprep.subr.bf16.mxu1 %v877_v1  ;;  %v882_v6 = vld [vmem:[%s1174_s1 + $0x8] sm:$0xff]   ;;  %v886_v10 = vld [vmem:[%s1174_s1 + $0x10] sm:$0xff]  }
   0x4   :  { %v879_v3 = vld [vmem:[%s1174_s1 + $0x80] sm:$0xff]   ;;  %789 = vmatpush3.bf16.msra.mxu0 %v878_v2  ;;  %v883_v7 = vld [vmem:[%s1174_s1 + $0x88] sm:$0xff]   ;;  %v887_v11 = vld [vmem:[%s1174_s1 + $0x90] sm:$0xff]  }
   0x5   :  { %811 = vmatpush3.bf16.msra.mxu1 %v879_v3  ;;  %790 = vmatprep.subr.bf16.mxu0 %v880_v4  ;;  %v888_v12 = vld [vmem:[%s1174_s1 + $0x58] sm:$0xff]   ;;  %v892_v16 = vld [vmem:[%s1174_s1 + $0x60] sm:$0xff]   ;;  %v896_v20 = vld [vmem:[%s1174_s1 + $0x68] sm:$0xff]  }
   0x6   :  { %812 = vmatprep.subr.bf16.mxu1 %v881_v5  ;;  %v889_v13 = vld [vmem:[%s1174_s1 + $0xd8] sm:$0xff]   ;;  %v893_v17 = vld [vmem:[%s1174_s1 + $0xe0] sm:$0xff]   ;;  %v897_v21 = vld [vmem:[%s1174_s1 + $0xe8] sm:$0xff]  }
   0x7   :  { %v890_v14 = vld [vmem:[%s1174_s1 + $0x18] sm:$0xff]   ;;  %v894_v18 = vld [vmem:[%s1174_s1 + $0x20] sm:$0xff]   ;;  %v898_v22 = vld [vmem:[%s1174_s1 + $0x28] sm:$0xff]  }
   0x8   :  { %791 = vmatpush3.bf16.msra.mxu0 %v882_v6  ;;  %v891_v15 = vld [vmem:[%s1174_s1 + $0x98] sm:$0xff]   ;;  %v895_v19 = vld [vmem:[%s1174_s1 + $0xa0] sm:$0xff]   ;;  %v899_v23 = vld [vmem:[%s1174_s1 + $0xa8] sm:$0xff]  }
   0x9   :  { %813 = vmatpush3.bf16.msra.mxu1 %v883_v7  ;;  %792 = vmatprep.subr.bf16.mxu0 %v884_v8  ;;  %v900_v24 = vld [vmem:[%s1174_s1 + $0x70] sm:$0xff]   ;;  %v904_v28 = vld [vmem:[%s1174_s1 + $0x78] sm:$0xff]   ;;  %v15_v32 = vld [vmem:[%s1175_s0] sm:$0xff] }
   0xa   :  { %814 = vmatprep.subr.bf16.mxu1 %v885_v9  ;;  %v901_v25 = vld [vmem:[%s1174_s1 + $0xf0] sm:$0xff]   ;;  %v905_v29 = vld [vmem:[%s1174_s1 + $0xf8] sm:$0xff]   ;;  %v16_v33 = vld [vmem:[%s1175_s0 + $0x8] sm:$0xff]  ;;  %v23_v34 = vcombine.high %v15_v32, %v15_v32  ;;  %v31_v37 = vpack.c.bf16 %v15_v32, %v15_v32 }
   0xb   :  { %v902_v26 = vld [vmem:[%s1174_s1 + $0x30] sm:$0xff]   ;;  %v906_v30 = vld [vmem:[%s1174_s1 + $0x38] sm:$0xff]   ;;  %v24_v35 = vcombine.high %v16_v33, %v16_v33  ;;  %v910_v36 = vld [vmem:[%s1174_s1 + $0x140] sm:$0xff]   ;;  %v33_v38 = vpack.c.bf16 %v16_v33, %v16_v33 }
   0xc   :  { %793 = vmatpush3.bf16.msra.mxu0 %v886_v10  ;;  %v903_v27 = vld [vmem:[%s1174_s1 + $0xb0] sm:$0xff]   ;;  %v907_v31 = vld [vmem:[%s1174_s1 + $0xb8] sm:$0xff]   ;;  %v911_v39 = vld [vmem:[%s1174_s1 + $0x1c0] sm:$0xff]   ;;  %v32_v40 = vpack.c.bf16 %v23_v34, %v23_v34 }
   0xd   :  { %815 = vmatpush3.bf16.msra.mxu1 %v887_v11  ;;  %794 = vmatprep.subr.bf16.mxu0 %v888_v12  ;;  %v34_v41 = vpack.c.bf16 %v24_v35, %v24_v35  ;;  %v912_v42 = vld [vmem:[%s1174_s1 + $0x100] sm:$0xff]   ;;  %v914_v44 = vld [vmem:[%s1174_s1 + $0x148] sm:$0xff]   ;;  %v918_v48 = vld [vmem:[%s1174_s1 + $0x150] sm:$0xff]  }
   0xe   :  { %816 = vmatprep.subr.bf16.mxu1 %v889_v13  ;;  %v913_v43 = vld [vmem:[%s1174_s1 + $0x180] sm:$0xff]   ;;  %590 = vmatprep.mubr.bf16.mxu0 %v32_v40  ;;  %v915_v45 = vld [vmem:[%s1174_s1 + $0x1c8] sm:$0xff]   ;;  %v919_v49 = vld [vmem:[%s1174_s1 + $0x1d0] sm:$0xff]  }
   0xf   :  { %630 = vmatprep.mubr.bf16.mxu1 %v34_v41  ;;  %v916_v46 = vld [vmem:[%s1174_s1 + $0x108] sm:$0xff]   ;;  %v920_v50 = vld [vmem:[%s1174_s1 + $0x110] sm:$0xff]   ;;  %v922_v52 = vld [vmem:[%s1174_s1 + $0x158] sm:$0xff]  }
  0x10   :  { %795 = vmatpush3.bf16.msra.mxu0 %v890_v14  ;;  %v917_v47 = vld [vmem:[%s1174_s1 + $0x188] sm:$0xff]   ;;  %v921_v51 = vld [vmem:[%s1174_s1 + $0x190] sm:$0xff]   ;;  %v923_v53 = vld [vmem:[%s1174_s1 + $0x1d8] sm:$0xff]  }
  0x11   :  { %817 = vmatpush3.bf16.msra.mxu1 %v891_v15  ;;  %796 = vmatprep.subr.bf16.mxu0 %v892_v16  ;;  %v924_v54 = vld [vmem:[%s1174_s1 + $0x118] sm:$0xff]   ;;  %v926_v56 = vld [vmem:[%s1174_s1 + $0x160] sm:$0xff]   ;;  %v930_v60 = vld [vmem:[%s1174_s1 + $0x168] sm:$0xff]  }
  0x12   :  { %818 = vmatprep.subr.bf16.mxu1 %v893_v17  ;;  %v925_v55 = vld [vmem:[%s1174_s1 + $0x198] sm:$0xff]   ;;  %v927_v57 = vld [vmem:[%s1174_s1 + $0x1e0] sm:$0xff]   ;;  %v931_v61 = vld [vmem:[%s1174_s1 + $0x1e8] sm:$0xff]  }
  0x13   :  { %v928_v58 = vld [vmem:[%s1174_s1 + $0x120] sm:$0xff]   ;;  %v932_v62 = vld [vmem:[%s1174_s1 + $0x128] sm:$0xff]   ;;  %v934_v0 = vld [vmem:[%s1174_s1 + $0x170] sm:$0xff]  }
  0x14   :  { %797 = vmatpush3.bf16.msra.mxu0 %v894_v18  ;;  %v929_v59 = vld [vmem:[%s1174_s1 + $0x1a0] sm:$0xff]   ;;  %v933_v63 = vld [vmem:[%s1174_s1 + $0x1a8] sm:$0xff]   ;;  %v935_v1 = vld [vmem:[%s1174_s1 + $0x1f0] sm:$0xff]  }
  0x15   :  { %819 = vmatpush3.bf16.msra.mxu1 %v895_v19  ;;  %798 = vmatprep.subr.bf16.mxu0 %v896_v20  ;;  %v936_v2 = vld [vmem:[%s1174_s1 + $0x130] sm:$0xff]   ;;  %v938_v4 = vld [vmem:[%s1174_s1 + $0x178] sm:$0xff]   ;;  %v723_v18 = vld [vmem:[%s1176_s2] ss:$0 sm:$0xff] }
  0x16   :  { %820 = vmatprep.subr.bf16.mxu1 %v897_v21  ;;  %v937_v3 = vld [vmem:[%s1174_s1 + $0x1b0] sm:$0xff]   ;;  %v939_v5 = vld [vmem:[%s1174_s1 + $0x1f8] sm:$0xff]  }
  0x17   :  { %v940_v6 = vld [vmem:[%s1174_s1 + $0x138] sm:$0xff]   ;;  %v17_v8 = vld [vmem:[%s1175_s0 + $0x10] sm:$0xff] }
  0x18   :  { %799 = vmatpush3.bf16.msra.mxu0 %v898_v22  ;;  %v941_v7 = vld [vmem:[%s1174_s1 + $0x1b8] sm:$0xff]   ;;  %v25_v9 = vcombine.high %v17_v8, %v17_v8  ;;  %v35_v11 = vpack.c.bf16 %v17_v8, %v17_v8 }
  0x19   :  { %821 = vmatpush3.bf16.msra.mxu1 %v899_v23  ;;  %800 = vmatprep.subr.bf16.mxu0 %v900_v24  ;;  %v18_v10 = vld [vmem:[%s1175_s0 + $0x18] sm:$0xff] }
  0x1a   :  { %822 = vmatprep.subr.bf16.mxu1 %v901_v25  ;;  %v26_v12 = vcombine.high %v18_v10, %v18_v10  ;;  %v36_v13 = vpack.c.bf16 %v25_v9, %v25_v9  ;;  %v37_v14 = vpack.c.bf16 %v18_v10, %v18_v10 }
  0x1c   :  { %801 = vmatpush3.bf16.msra.mxu0 %v902_v26  ;;  %v38_v15 = vpack.c.bf16 %v26_v12, %v26_v12 }
  0x1d   :  { %823 = vmatpush3.bf16.msra.mxu1 %v903_v27  ;;  %802 = vmatprep.subr.bf16.mxu0 %v904_v28 }
  0x1e   :  { %824 = vmatprep.subr.bf16.mxu1 %v905_v29 }
  0x20   :  { %803 = vmatpush3.bf16.msra.mxu0 %v906_v30 }
  0x21   :  { %825 = vmatpush3.bf16.msra.mxu1 %v907_v31  ;;  %832 = vmatprep.subr.bf16.mxu0 %v910_v36 }
  0x22   :  { %854 = vmatprep.subr.bf16.mxu1 %v911_v39 }
  0x23   :  { %591 = vmatmul.mubr.bf16.vlgmr.msra.gmra.mrb[0].mxu0 %v31_v37 }
  0x24   :  { %631 = vmatmul.mubr.bf16.vlgmr.msra.gmra.mrb[0].mxu1 %v33_v38  ;;  %833 = vmatpush3.bf16.msra.mxu0 %v912_v42 }
  0x25   :  { %855 = vmatpush3.bf16.msra.mxu1 %v913_v43  ;;  %834 = vmatprep.subr.bf16.mxu0 %v914_v44 }
  0x26   :  { %856 = vmatprep.subr.bf16.mxu1 %v915_v45  ;;  %670 = vmatprep.mubr.bf16.mxu0 %v36_v13 }
  0x27   :  { %710 = vmatprep.mubr.bf16.mxu1 %v38_v15 }
  0x28   :  { %835 = vmatpush3.bf16.msra.mxu0 %v916_v46 }
  0x29   :  { %857 = vmatpush3.bf16.msra.mxu1 %v917_v47  ;;  %836 = vmatprep.subr.bf16.mxu0 %v918_v48 }
  0x2a   :  { %858 = vmatprep.subr.bf16.mxu1 %v919_v49 }
  0x2c   :  { %837 = vmatpush3.bf16.msra.mxu0 %v920_v50 }
  0x2d   :  { %859 = vmatpush3.bf16.msra.mxu1 %v921_v51  ;;  %838 = vmatprep.subr.bf16.mxu0 %v922_v52 }
  0x2e   :  { %860 = vmatprep.subr.bf16.mxu1 %v923_v53 }
  0x30   :  { %839 = vmatpush3.bf16.msra.mxu0 %v924_v54 }
  0x31   :  { %861 = vmatpush3.bf16.msra.mxu1 %v925_v55  ;;  %840 = vmatprep.subr.bf16.mxu0 %v926_v56 }
  0x32   :  { %862 = vmatprep.subr.bf16.mxu1 %v927_v57 }
  0x34   :  { %841 = vmatpush3.bf16.msra.mxu0 %v928_v58 }
  0x35   :  { %863 = vmatpush3.bf16.msra.mxu1 %v929_v59  ;;  %842 = vmatprep.subr.bf16.mxu0 %v930_v60 }
  0x36   :  { %864 = vmatprep.subr.bf16.mxu1 %v931_v61 }
  0x38   :  { %843 = vmatpush3.bf16.msra.mxu0 %v932_v62 }
  0x39   :  { %865 = vmatpush3.bf16.msra.mxu1 %v933_v63  ;;  %844 = vmatprep.subr.bf16.mxu0 %v934_v0 }
  0x3a   :  { %866 = vmatprep.subr.bf16.mxu1 %v935_v1 }
  0x3c   :  { %845 = vmatpush3.bf16.msra.mxu0 %v936_v2 }
  0x3d   :  { %867 = vmatpush3.bf16.msra.mxu1 %v937_v3  ;;  %846 = vmatprep.subr.bf16.mxu0 %v938_v4 }
  0x3e   :  { %868 = vmatprep.subr.bf16.mxu1 %v939_v5 }
  0x40   :  { %847 = vmatpush3.bf16.msra.mxu0 %v940_v6 }
  0x41   :  { %869 = vmatpush3.bf16.msra.mxu1 %v941_v7 }
  0x43   :  { %671 = vmatmul.mubr.bf16.vlgmr.msra.gmra.mrb[4].mxu0 %v35_v11 }
  0x44   :  { %711 = vmatmul.mubr.bf16.vlgmr.msra.gmra.mrb[4].mxu1 %v37_v14 }
  0xf6   :  { %v804_v16 = vpop.f32.mrb[0].mxu0 }
  0xf7   :  { %v826_v17 = vpop.f32.mrb[0].mxu1  ;;  %v805_v19 = vpop.f32.mrb[1].mxu0 }
  0xf8   :  { %v827_v20 = vpop.f32.mrb[1].mxu1  ;;  %v806_v21 = vadd.f32 %v805_v19, %v804_v16  ;;  %v807_v23 = vpop.f32.mrb[2].mxu0 }
  0xf9   :  { %v828_v22 = vadd.f32 %v827_v20, %v826_v17  ;;  %v829_v24 = vpop.f32.mrb[2].mxu1  ;;  %v808_v25 = vpop.f32.mrb[3].mxu0 }
  0xfa   :  { %v830_v26 = vpop.f32.mrb[3].mxu1  ;;  %v593_v27 = vadd.f32 %v806_v21, %v723_v18 }
  0xfc   :  { %v633_v28 = vadd.f32 %v828_v22, %v593_v27 }
 0x116   :  { %v848_v29 = vpop.f32.mrb[4].mxu0 }
 0x117   :  { %v870_v30 = vpop.f32.mrb[4].mxu1  ;;  %v849_v31 = vpop.f32.mrb[5].mxu0 }
 0x118   :  { %v850_v32 = vadd.f32 %v849_v31, %v848_v29  ;;  %v871_v33 = vpop.f32.mrb[5].mxu1  ;;  %v851_v34 = vpop.f32.mrb[6].mxu0 }
 0x119   :  { %v872_v35 = vadd.f32 %v871_v33, %v870_v30  ;;  %v873_v36 = vpop.f32.mrb[6].mxu1  ;;  %v852_v37 = vpop.f32.mrb[7].mxu0 }
 0x11a   :  { %v673_v38 = vadd.f32 %v850_v32, %v633_v28  ;;  %v874_v39 = vpop.f32.mrb[7].mxu1 }
 0x11c   :  { %v713_v40 = vadd.f32 %v872_v35, %v673_v38 }
 0x11e   :  { %718 = vst [vmem:[%s1177_s3] sm:$0xf] %v713_v40 }

</bundles_post_ra>
